<compile_context>
chip_gen: v6e
topology: v6e:2x2x1
jax: 0.10.0
libtpu: 0.0.40
codegen_flags: <defaults>
</compile_context>

<pallas_src>
import functools

import jax
import jax.numpy as jnp
from jax.experimental import pallas as pl
from jax.experimental.pallas import tpu as pltpu


def _round_up(x, m):
    return ((x + m - 1) // m) * m


def rpgnet_kernel(obs_ref,
                  w1_ref, b1_ref, w2_ref, b2_ref,      # feature net
                  wpack_ref, bpack_ref,                # [actor | critic-L1(phi)] packed
                  wc1a_ref,                            # critic-L1 (action part)
                  wc2row_ref, bc2_ref,                 # critic-L2 row vector + SMEM scalar
                  out_ref,
                  *, act_dim, act_pad):
    cdt = w1_ref.dtype                                 # matmul-operand dtype (bf16 or f32)
    obs = obs_ref[...]

    # ---- feature_net: phi = relu(relu(obs @ W1 + b1) @ W2 + b2) ----
    h = jnp.dot(obs, w1_ref[...], preferred_element_type=jnp.float32) + b1_ref[...]
    h = jnp.maximum(h, 0.0).astype(cdt)
    phi = jnp.dot(h, w2_ref[...], preferred_element_type=jnp.float32) + b2_ref[...]
    phi = jnp.maximum(phi, 0.0).astype(cdt)

    # ---- fused actor + critic-layer-1(phi) matmul ----
    # wpack columns: [0:act_dim) = Wa (zero padded to act_pad), [act_pad:) = Wc1p.
    z = jnp.dot(phi, wpack_ref[...], preferred_element_type=jnp.float32) + bpack_ref[...]

    # actor head (deterministic=True); padded lanes are tanh(0) = 0.
    # TODO(synk): stochastic sampling path (deterministic=False) would need in-kernel PRNG noise.
    action = jnp.tanh(z[:, :act_pad])

    # critic layer 1: concat(phi, action) expressed as a split matmul.
    c = z[:, act_pad:] + jnp.dot(action.astype(cdt), wc1a_ref[...],
                                 preferred_element_type=jnp.float32)
    c = jnp.maximum(c, 0.0)

    # critic layer 2 (N=1): VPU multiply + lane reduce instead of an MXU dot.
    reward = jnp.sum(c * wc2row_ref[...], axis=-1, keepdims=True) + bc2_ref[0]

    # pack [action | reward] into one lane-dense slab: lane `act_dim` carries reward.
    lane = jax.lax.broadcasted_iota(jnp.int32, action.shape, 1)
    out_ref[...] = jnp.where(lane == act_dim, reward, action).astype(out_ref.dtype)


def pack_rpgnet_params(params, compute_dtype=jnp.bfloat16):
    """Pack/cast weights ONCE (hoisted out of the per-call forward path)."""
    wa, ba = params["wa"], params["ba"]
    wc1p, wc1a, bc1 = params["wc1p"], params["wc1a"], params["bc1"]
    wc2, bc2 = params["wc2"], params["bc2"]

    feat, act_dim = wa.shape
    chid = wc1p.shape[1]
    act_pad = _round_up(act_dim + 1, 128)   # +1 guarantees a spare lane for the reward
    chid_pad = _round_up(chid, 128)

    wpack = jnp.zeros((feat, act_pad + chid_pad), jnp.float32)
    wpack = wpack.at[:, :act_dim].set(wa)
    wpack = wpack.at[:, act_pad:act_pad + chid].set(wc1p)

    bpack = jnp.zeros((1, act_pad + chid_pad), jnp.float32)
    bpack = bpack.at[:, :act_dim].set(ba)
    bpack = bpack.at[:, act_pad:act_pad + chid].set(bc1)

    wc1a_pad = jnp.zeros((act_pad, chid_pad), jnp.float32)
    wc1a_pad = wc1a_pad.at[:act_dim, :chid].set(wc1a)

    wc2row = jnp.zeros((1, chid_pad), jnp.float32)
    wc2row = wc2row.at[:, :chid].set(wc2.T)

    cdt = compute_dtype
    return dict(
        # MXU operands in compute dtype; biases / reward row stay f32 (VPU math is f32).
        w1=params["w1"].astype(cdt), b1=params["b1"].astype(jnp.float32),
        w2=params["w2"].astype(cdt), b2=params["b2"].astype(jnp.float32),
        wpack=wpack.astype(cdt), bpack=bpack,
        wc1a=wc1a_pad.astype(cdt),
        wc2row=wc2row, bc2=bc2.reshape((1,)).astype(jnp.float32),
        act_dim=act_dim, act_pad=act_pad,
    )


def rpgnet_forward(obs, packed, *, tb=1024, out_dtype=jnp.float32):
    """Forward pass. `packed` comes from pack_rpgnet_params (call it once, reuse)."""
    B, obs_dim = obs.shape
    act_dim, act_pad = packed["act_dim"], packed["act_pad"]
    cdt = packed["w1"].dtype

    # Sublane granularity: bf16 packs (16, 128) per vreg, f32 packs (8, 128).
    sub = 8 if jnp.dtype(cdt).itemsize >= 4 else 16

    if B <= tb:
        # Small batch: ONE grid step, block == full batch dim (no (8,128)-divisibility
        # requirement, no padding, no extra ~0.35 us per-step overhead).
        tb_eff = B
        grid = (1,)
    else:
        # Large batch: multi-step grid; last block may be partial (rows are independent,
        # out-of-bounds rows are never written back).  On v7x pick tb <= B//2 so the
        # "parallel" axis shards over both TensorCores.
        tb_eff = max(sub, (tb // sub) * sub)
        grid = (pl.cdiv(B, tb_eff),)

    obs = obs.astype(cdt)

    def _resident(x):
        # Weight/bias: same block every grid step -> stays in VMEM, DMA'd once.
        # (pipeline_mode=pl.Buffered(1) could drop the duplicate buffer; at these sizes
        #  the resident weights are ~100 KB so the default buffering is a non-issue.)
        return pl.BlockSpec(x.shape, lambda i: (0, 0))

    in_specs = [
        pl.BlockSpec((tb_eff, obs_dim), lambda i: (i, 0)),   # obs: batch-tiled
        _resident(packed["w1"]), _resident(packed["b1"]),
        _resident(packed["w2"]), _resident(packed["b2"]),
        _resident(packed["wpack"]), _resident(packed["bpack"]),
        _resident(packed["wc1a"]),
        _resident(packed["wc2row"]),
        pl.BlockSpec(memory_space=pltpu.MemorySpace.SMEM),   # bc2 scalar
    ]

    kernel = functools.partial(rpgnet_kernel, act_dim=act_dim, act_pad=act_pad)

    # VMEM at tb=1024: obs/out tiles + intermediates + weights ~ a few MB -> well under
    # the 32 MiB scoped default on all generations; only sweep vmem_limit_bytes if tb is
    # pushed into the many-thousands of rows on v7x (64 MiB physical VMEM).
    slab = pl.pallas_call(
        kernel,
        grid=grid,
        in_specs=in_specs,
        out_specs=pl.BlockSpec((tb_eff, act_pad), lambda i: (i, 0)),
        out_shape=jax.ShapeDtypeStruct((B, act_pad), out_dtype),
        compiler_params=pltpu.CompilerParams(
            dimension_semantics=("parallel",)),
    )(obs, packed["w1"], packed["b1"], packed["w2"], packed["b2"],
      packed["wpack"], packed["bpack"], packed["wc1a"], packed["wc2row"],
      packed["bc2"])

    return {"action": slab[:, :act_dim],
            "reward": slab[:, act_dim:act_dim + 1]}


def init_params(key, obs_dim, hidden, feat, act_dim, critic_hidden):
    ks = jax.random.split(key, 8)

    def lin(k, fan_in, fan_out):
        bound = 1.0 / jnp.sqrt(fan_in)
        return jax.random.uniform(k, (fan_in, fan_out), jnp.float32, -bound, bound)

    return {
        # feature net
        "w1": lin(ks[0], obs_dim, hidden),
        "b1": jnp.zeros((1, hidden), jnp.float32),
        "w2": lin(ks[1], hidden, feat),
        "b2": jnp.zeros((1, feat), jnp.float32),
        # actor net
        "wa": lin(ks[2], feat, act_dim),
        "ba": jnp.zeros((1, act_dim), jnp.float32),
        # critic net (first layer weight split for concat(phi, action))
        "wc1p": lin(ks[3], feat, critic_hidden),
        "wc1a": lin(ks[4], act_dim, critic_hidden),
        "bc1": jnp.zeros((1, critic_hidden), jnp.float32),
        "wc2": lin(ks[5], critic_hidden, 1),
        "bc2": jnp.zeros((1, 1), jnp.float32),
    }


if __name__ == "__main__":
    key = jax.random.PRNGKey(0)
    k_obs, k_param = jax.random.split(key)

    # (If model widths were tunable, HID/FEAT/CHID = 128+ would fill MXU tiles for free;
    #  kept at the module's small sizes here.)
    B, OBS, HID, FEAT, ACT, CHID = 64, 32, 64, 64, 16, 64

    obs = jax.random.normal(k_obs, (B, OBS), jnp.float32)
    params = init_params(k_param, OBS, HID, FEAT, ACT, CHID)

    # Pure-JAX f32 reference of the same math.
    h = jnp.maximum(obs @ params["w1"] + params["b1"], 0.0)
    phi = jnp.maximum(h @ params["w2"] + params["b2"], 0.0)
    a_ref = jnp.tanh(phi @ params["wa"] + params["ba"])
    c = jnp.maximum(phi @ params["wc1p"] + a_ref @ params["wc1a"] + params["bc1"], 0.0)
    r_ref = c @ params["wc2"] + params["bc2"]

    # --- f32 compute path: single grid step for B=64, tight exact-math check. ---
    packed_f32 = pack_rpgnet_params(params, compute_dtype=jnp.float32)
    fwd_f32 = jax.jit(lambda o: rpgnet_forward(o, packed_f32))
    out_f32 = fwd_f32(obs)
    jax.block_until_ready(out_f32)
    assert out_f32["action"].shape == (B, ACT) and out_f32["reward"].shape == (B, 1)
    assert jnp.allclose(out_f32["action"], a_ref, atol=1e-4, rtol=1e-4)
    assert jnp.allclose(out_f32["reward"], r_ref, atol=1e-4, rtol=1e-4)

    # --- default bf16 matmul-operand path (f32 accumulate + f32 elementwise). ---
    packed_bf16 = pack_rpgnet_params(params)           # compute_dtype=bf16 by default
    fwd_bf16 = jax.jit(lambda o: rpgnet_forward(o, packed_bf16))
    out_bf16 = fwd_bf16(obs)
    jax.block_until_ready(out_bf16)
    assert jnp.allclose(out_bf16["action"], a_ref, atol=5e-2, rtol=5e-2)
    assert jnp.allclose(out_bf16["reward"], r_ref, atol=1e-1, rtol=1e-1)

    # --- larger batch: 2 batch tiles on the "parallel" axis (v7x megacore shape). ---
    obs_big = jax.random.normal(k_obs, (256, OBS), jnp.float32)
    out_big = rpgnet_forward(obs_big, packed_bf16, tb=128)
    jax.block_until_ready(out_big)
    assert out_big["action"].shape == (256, ACT) and out_big["reward"].shape == (256, 1)

    print("KERNEL_OK")
</pallas_src>

<mosaic_0001>
module attributes {stable_mosaic.version = 11 : i64} {
  func.func @rpgnet_kernel(%arg0: i32, %arg1: memref<64x32xf32, #tpu.memory_space<vmem>>, %arg2: memref<32x64xf32, #tpu.memory_space<vmem>>, %arg3: memref<1x64xf32, #tpu.memory_space<vmem>>, %arg4: memref<64x64xf32, #tpu.memory_space<vmem>>, %arg5: memref<1x64xf32, #tpu.memory_space<vmem>>, %arg6: memref<64x256xf32, #tpu.memory_space<vmem>>, %arg7: memref<1x256xf32, #tpu.memory_space<vmem>>, %arg8: memref<128x128xf32, #tpu.memory_space<vmem>>, %arg9: memref<1x128xf32, #tpu.memory_space<vmem>>, %arg10: memref<1xf32, #tpu.memory_space<smem>>, %arg11: memref<64x128xf32, #tpu.memory_space<vmem>>) attributes {dimension_semantics = [#tpu.dimension_semantics<parallel>], iteration_bounds = array<i64: 1>, scalar_prefetch = 0 : i64, scratch_operands = 0 : i64, tpu.core_type = #tpu.core_type<tc>, window_params = [{transform_indices = @transform_0, window_bounds = array<i64: 64, 32>}, {pipeline_mode = #tpu.pipeline_mode<synchronous>, transform_indices = @transform_1, window_bounds = array<i64: 32, 64>}, {pipeline_mode = #tpu.pipeline_mode<synchronous>, transform_indices = @transform_2, window_bounds = array<i64: 1, 64>}, {pipeline_mode = #tpu.pipeline_mode<synchronous>, transform_indices = @transform_3, window_bounds = array<i64: 64, 64>}, {pipeline_mode = #tpu.pipeline_mode<synchronous>, transform_indices = @transform_4, window_bounds = array<i64: 1, 64>}, {pipeline_mode = #tpu.pipeline_mode<synchronous>, transform_indices = @transform_5, window_bounds = array<i64: 64, 256>}, {pipeline_mode = #tpu.pipeline_mode<synchronous>, transform_indices = @transform_6, window_bounds = array<i64: 1, 256>}, {pipeline_mode = #tpu.pipeline_mode<synchronous>, transform_indices = @transform_7, window_bounds = array<i64: 128, 128>}, {pipeline_mode = #tpu.pipeline_mode<synchronous>, transform_indices = @transform_8, window_bounds = array<i64: 1, 128>}, {transform_indices = @transform_9, window_bounds = array<i64: 1>}, {transform_indices = @transform_10, window_bounds = array<i64: 64, 128>}]} {
    %c0 = arith.constant 0 : index
    %c0_0 = arith.constant 0 : index
    %0 = vector.load %arg1[%c0, %c0_0] : memref<64x32xf32, #tpu.memory_space<vmem>>, vector<64x32xf32>
    %c0_1 = arith.constant 0 : index
    %c0_2 = arith.constant 0 : index
    %1 = vector.load %arg2[%c0_1, %c0_2] : memref<32x64xf32, #tpu.memory_space<vmem>>, vector<32x64xf32>
    %cst = arith.constant dense<0.000000e+00> : vector<64x64xf32>
    %2 = tpu.matmul %0, %1, %cst {dimension_numbers = #tpu.dot_dimension_numbers<[1], [0], [0], [1], [0, 0, 1, 1], [], []>} : vector<64x32xf32>, vector<32x64xf32>, vector<64x64xf32> -> vector<64x64xf32>
    %c0_3 = arith.constant 0 : index
    %c0_4 = arith.constant 0 : index
    %3 = vector.load %arg3[%c0_3, %c0_4] : memref<1x64xf32, #tpu.memory_space<vmem>>, vector<1x64xf32>
    %4 = vector.broadcast %3 : vector<1x64xf32> to vector<64x64xf32>
    %5 = arith.addf %2, %4 : vector<64x64xf32>
    %cst_5 = arith.constant 0.000000e+00 : f32
    %6 = vector.broadcast %cst_5 : f32 to vector<64x64xf32>
    %7 = arith.maximumf %5, %6 : vector<64x64xf32>
    %c0_6 = arith.constant 0 : index
    %c0_7 = arith.constant 0 : index
    %8 = vector.load %arg4[%c0_6, %c0_7] : memref<64x64xf32, #tpu.memory_space<vmem>>, vector<64x64xf32>
    %cst_8 = arith.constant dense<0.000000e+00> : vector<64x64xf32>
    %9 = tpu.matmul %7, %8, %cst_8 {dimension_numbers = #tpu.dot_dimension_numbers<[1], [0], [0], [1], [0, 0, 1, 1], [], []>} : vector<64x64xf32>, vector<64x64xf32>, vector<64x64xf32> -> vector<64x64xf32>
    %c0_9 = arith.constant 0 : index
    %c0_10 = arith.constant 0 : index
    %10 = vector.load %arg5[%c0_9, %c0_10] : memref<1x64xf32, #tpu.memory_space<vmem>>, vector<1x64xf32>
    %11 = vector.broadcast %10 : vector<1x64xf32> to vector<64x64xf32>
    %12 = arith.addf %9, %11 : vector<64x64xf32>
    %cst_11 = arith.constant 0.000000e+00 : f32
    %13 = vector.broadcast %cst_11 : f32 to vector<64x64xf32>
    %14 = arith.maximumf %12, %13 : vector<64x64xf32>
    %c0_12 = arith.constant 0 : index
    %c0_13 = arith.constant 0 : index
    %15 = vector.load %arg6[%c0_12, %c0_13] : memref<64x256xf32, #tpu.memory_space<vmem>>, vector<64x256xf32>
    %cst_14 = arith.constant dense<0.000000e+00> : vector<64x256xf32>
    %16 = tpu.matmul %14, %15, %cst_14 {dimension_numbers = #tpu.dot_dimension_numbers<[1], [0], [0], [1], [0, 0, 1, 1], [], []>} : vector<64x64xf32>, vector<64x256xf32>, vector<64x256xf32> -> vector<64x256xf32>
    %c0_15 = arith.constant 0 : index
    %c0_16 = arith.constant 0 : index
    %17 = vector.load %arg7[%c0_15, %c0_16] : memref<1x256xf32, #tpu.memory_space<vmem>>, vector<1x256xf32>
    %18 = vector.broadcast %17 : vector<1x256xf32> to vector<64x256xf32>
    %19 = arith.addf %16, %18 : vector<64x256xf32>
    %20 = vector.extract_strided_slice %19 {offsets = [0, 0], sizes = [64, 128], strides = [1, 1]} : vector<64x256xf32> to vector<64x128xf32>
    %21 = math.tanh %20 : vector<64x128xf32>
    %22 = vector.extract_strided_slice %19 {offsets = [0, 128], sizes = [64, 128], strides = [1, 1]} : vector<64x256xf32> to vector<64x128xf32>
    %c0_17 = arith.constant 0 : index
    %c0_18 = arith.constant 0 : index
    %23 = vector.load %arg8[%c0_17, %c0_18] : memref<128x128xf32, #tpu.memory_space<vmem>>, vector<128x128xf32>
    %cst_19 = arith.constant dense<0.000000e+00> : vector<64x128xf32>
    %24 = tpu.matmul %21, %23, %cst_19 {dimension_numbers = #tpu.dot_dimension_numbers<[1], [0], [0], [1], [0, 0, 1, 1], [], []>} : vector<64x128xf32>, vector<128x128xf32>, vector<64x128xf32> -> vector<64x128xf32>
    %25 = arith.addf %22, %24 : vector<64x128xf32>
    %cst_20 = arith.constant 0.000000e+00 : f32
    %26 = vector.broadcast %cst_20 : f32 to vector<64x128xf32>
    %27 = arith.maximumf %25, %26 : vector<64x128xf32>
    %c0_21 = arith.constant 0 : index
    %c0_22 = arith.constant 0 : index
    %28 = vector.load %arg9[%c0_21, %c0_22] : memref<1x128xf32, #tpu.memory_space<vmem>>, vector<1x128xf32>
    %29 = vector.broadcast %28 : vector<1x128xf32> to vector<64x128xf32>
    %30 = arith.mulf %27, %29 : vector<64x128xf32>
    %cst_23 = arith.constant dense<0.000000e+00> : vector<64xf32>
    %31 = vector.multi_reduction <add>, %30, %cst_23 [1] : vector<64x128xf32> to vector<64xf32>
    %32 = vector.shape_cast %31 : vector<64xf32> to vector<64x1xf32>
    %c0_24 = arith.constant 0 : index
    %33 = memref.load %arg10[%c0_24] : memref<1xf32, #tpu.memory_space<smem>>
    %34 = vector.broadcast %33 : f32 to vector<64x1xf32>
    %35 = arith.addf %32, %34 : vector<64x1xf32>
    %36 = tpu.iota {dimensions = array<i32: 1>} : vector<64x128xi32>
    %c16_i32 = arith.constant 16 : i32
    %37 = vector.broadcast %c16_i32 : i32 to vector<64x128xi32>
    %38 = arith.cmpi eq, %36, %37 : vector<64x128xi32>
    %39 = vector.shape_cast %35 : vector<64x1xf32> to vector<64x1xf32>
    %40 = vector.broadcast %39 : vector<64x1xf32> to vector<64x128xf32>
    %41 = arith.select %38, %40, %21 : vector<64x128xi1>, vector<64x128xf32>
    %c0_25 = arith.constant 0 : index
    %c0_26 = arith.constant 0 : index
    %42 = vector.load %arg11[%c0_25, %c0_26] : memref<64x128xf32, #tpu.memory_space<vmem>>, vector<64x128xf32>
    tpu.vector_store %arg11[%c0_25, %c0_26], %41 {strides = array<i32>} : memref<64x128xf32, #tpu.memory_space<vmem>>, vector<64x128xf32>,
    return
  }
  func.func @transform_0(%arg0: i32) -> (i32, i32) {
    %c0_i32 = arith.constant 0 : i32
    %c0_i32_0 = arith.constant 0 : i32
    return %arg0, %c0_i32 : i32, i32
  }
  func.func @transform_1(%arg0: i32) -> (i32, i32) {
    %c0_i32 = arith.constant 0 : i32
    %c0_i32_0 = arith.constant 0 : i32
    %c0_i32_1 = arith.constant 0 : i32
    return %c0_i32, %c0_i32_0 : i32, i32
  }
  func.func @transform_2(%arg0: i32) -> (i32, i32) {
    %c0_i32 = arith.constant 0 : i32
    %c0_i32_0 = arith.constant 0 : i32
    %c0_i32_1 = arith.constant 0 : i32
    return %c0_i32, %c0_i32_0 : i32, i32
  }
  func.func @transform_3(%arg0: i32) -> (i32, i32) {
    %c0_i32 = arith.constant 0 : i32
    %c0_i32_0 = arith.constant 0 : i32
    %c0_i32_1 = arith.constant 0 : i32
    return %c0_i32, %c0_i32_0 : i32, i32
  }
  func.func @transform_4(%arg0: i32) -> (i32, i32) {
    %c0_i32 = arith.constant 0 : i32
    %c0_i32_0 = arith.constant 0 : i32
    %c0_i32_1 = arith.constant 0 : i32
    return %c0_i32, %c0_i32_0 : i32, i32
  }
  func.func @transform_5(%arg0: i32) -> (i32, i32) {
    %c0_i32 = arith.constant 0 : i32
    %c0_i32_0 = arith.constant 0 : i32
    %c0_i32_1 = arith.constant 0 : i32
    return %c0_i32, %c0_i32_0 : i32, i32
  }
  func.func @transform_6(%arg0: i32) -> (i32, i32) {
    %c0_i32 = arith.constant 0 : i32
    %c0_i32_0 = arith.constant 0 : i32
    %c0_i32_1 = arith.constant 0 : i32
    return %c0_i32, %c0_i32_0 : i32, i32
  }
  func.func @transform_7(%arg0: i32) -> (i32, i32) {
    %c0_i32 = arith.constant 0 : i32
    %c0_i32_0 = arith.constant 0 : i32
    %c0_i32_1 = arith.constant 0 : i32
    return %c0_i32, %c0_i32_0 : i32, i32
  }
  func.func @transform_8(%arg0: i32) -> (i32, i32) {
    %c0_i32 = arith.constant 0 : i32
    %c0_i32_0 = arith.constant 0 : i32
    %c0_i32_1 = arith.constant 0 : i32
    return %c0_i32, %c0_i32_0 : i32, i32
  }
  func.func @transform_9(%arg0: i32) -> i32 {
    %c0_i32 = arith.constant 0 : i32
    %c0_i32_0 = arith.constant 0 : i32
    return %c0_i32 : i32
  }
  func.func @transform_10(%arg0: i32) -> (i32, i32) {
    %c0_i32 = arith.constant 0 : i32
    %c0_i32_0 = arith.constant 0 : i32
    return %arg0, %c0_i32 : i32, i32
  }
}

</mosaic_0001>

<bundles_post_ra>
// kernel: _lambda_.1
= control target key start
LH: loop header
LB: loop body
LE: loop exit
PB: predicated region body
PF: predicated region fallthrough
CT: control target
= control target key end

     0   :  { %16 = vsyncpa [#allocation4], 0  ;;  %s1261_s0 = inlined_call_operand.vmem [shape: f32[64,32], index: 0, kind: input, shape index: {}]   ;;  %s1262_s1 = inlined_call_operand.vmem [shape: f32[32,64], index: 1, kind: input, shape index: {}]   ;;  %s1263_s2 = inlined_call_operand.vmem [shape: f32[1,64], index: 2, kind: input, shape index: {}, may-alias: {2,4}]   ;;  %s1264_s3 = inlined_call_operand.vmem [shape: f32[64,64], index: 3, kind: input, shape index: {}]   ;;  %s1265_s4 = inlined_call_operand.vmem [shape: f32[1,64], index: 4, kind: input, shape index: {}, may-alias: {2,4}]   ;;  %s1266_s5 = inlined_call_operand.hbm [shape: f32[64,256], index: 5, kind: input, shape index: {}]   ;;  %s1267_s6 = inlined_call_operand.vmem [shape: f32[1,256], index: 6, kind: input, shape index: {}]   ;;  %s1268_s7 = inlined_call_operand.hbm [shape: f32[128,128], index: 7, kind: input, shape index: {}]   ;;  %s1269_s8 = inlined_call_operand.vmem [shape: f32[1,128], index: 8, kind: input, shape index: {}]   ;;  %s1270_s9 = inlined_call_operand.<no memory space> [shape: f32[1], index: 9, kind: input, shape index: {}]   ;;  %s1271_s10 = inlined_call_operand.vmem [shape: f32[64,128], index: 10, kind: output, shape index: {}]  }
   0x1   :  { %17 = vsyncpa [#allocation6], 0  ;;  %s1020_s13 = smov [#allocation3]  }
   0x2   :  { %s33_s14 = sshll.u32 %s1020_s13, 4  ;;  %s34_s14 = int_to_ptr.vmem [resolvable:$true] %s33_s14 }
   0x3   :  { %s984_s15 = scalar_lea.vmem %s34_s14, 2048  ;;  %p989_p1 = scmp.lt.s32.totalorder %s34_s14, %s34_s14 }
   0x4   :  { %p985_p0 = scmp.ne.s32.totalorder %s34_s14, %s984_s15  ;;  %p990_p2 = scmp.lt.s32.totalorder %s984_s15, %s984_s15 }
   0x6   :  { %p991_p3 = por %p990_p2, %p989_p1 }
   0x8   :  { %p992_p4 = pnand %p991_p3, %p985_p0 }
   0xa   :  { %995 = shalt.err (!%p992_p4)
}
   0xb   :  { %s1021_s16 = smov 256   ;;  %s1022_s17 = smov 16  }
   0xc   :  { %39 = dma.hbm_to_vmem [thread:$0]  %s1266_s5, 2048, %s34_s14, [#allocation4], %s1021_s16, %s1021_s16, %s1022_s17  }
   0xd   :  { %s1023_s20 = smov [#allocation5]  }
   0xe   :  { %s47_s21 = sshll.u32 %s1023_s20, 4  ;;  %s48_s21 = int_to_ptr.vmem [resolvable:$true] %s47_s21 }
   0xf   :  { %s1004_s22 = scalar_lea.vmem %s48_s21, 2048  ;;  %p1009_p6 = scmp.lt.s32.totalorder %s48_s21, %s48_s21 }
  0x10   :  { %p1005_p5 = scmp.ne.s32.totalorder %s48_s21, %s1004_s22  ;;  %p1010_p7 = scmp.lt.s32.totalorder %s1004_s22, %s1004_s22 }
  0x12   :  { %p1011_p8 = por %p1010_p7, %p1009_p6 }
  0x14   :  { %p1012_p9 = pnand %p1011_p8, %p1005_p5 }
  0x16   :  { %1015 = shalt.err (!%p1012_p9)
}
  0x17   :  { %s1024_s23 = smov 128   ;;  %s1025_s24 = smov 8  }
  0x18   :  { %53 = dma.hbm_to_vmem [thread:$0]  %s1268_s7, 2048, %s48_s21, [#allocation6], %s1024_s23, %s1024_s23, %s1025_s24  }
  0x19   :  { %1016 = dma.done.wait [#allocation4], 2048  }
  0x1a   :  { %1017 = vsyncadd [#allocation4], 4294965248 }
  0x1b   :  { %1018 = dma.done.wait [#allocation6], 2048  }
  0x1c   :  { %1019 = vsyncadd [#allocation6], 4294965248  ;;  %vm83_vm0 = vcmask 261120   ;;  %v75_v0 = vld [vmem:[%s1262_s1 + $0x18] sm:$0xff]  ;;  %v74_v1 = vld [vmem:[%s1262_s1 + $0x10] sm:$0xff]  ;;  %vm236_vm1 = vcmask 523264  }
  0x1d   :  { %829 = vmatprep.subr.mxu0 %v75_v0  ;;  %v64_v2 = vld [vmem:[%s1261_s0] sm:$0xff]  ;;  %v73_v3 = vld [vmem:[%s1262_s1 + $0x8] sm:$0xff]  ;;  %v228_v5 = vld [vmem:[%s1264_s3 + $0x38] sm:$0xff]  ;;  %v1026_v61 = vmov 0.0  }
  0x1e   :  { %830 = vmatpush3.msra.mxu0 %v75_v0  ;;  %837 = vmatprep.mubr.msk.f32.mxu0 %vm83_vm0, %v64_v2  ;;  %v72_v4 = vld [vmem:[%s1262_s1] sm:$0xff]  ;;  %v227_v6 = vld [vmem:[%s1264_s3 + $0x30] sm:$0xff]  ;;  %v65_v7 = vld [vmem:[%s1261_s0 + $0x8] sm:$0xff] }
  0x1f   :  { %831 = vmatprep.subr.mxu0 %v74_v1  ;;  %849 = vmatprep.subr.mxu1 %v228_v5  ;;  %v226_v8 = vld [vmem:[%s1264_s3 + $0x28] sm:$0xff]  ;;  %v66_v9 = vld [vmem:[%s1261_s0 + $0x10] sm:$0xff]  ;;  %v225_v10 = vld [vmem:[%s1264_s3 + $0x20] sm:$0xff] }
  0x20   :  { %832 = vmatpush3.msra.mxu0 %v74_v1  ;;  %850 = vmatpush3.msra.mxu1 %v228_v5  ;;  %v67_v11 = vld [vmem:[%s1261_s0 + $0x18] sm:$0xff]  ;;  %v68_v12 = vld [vmem:[%s1261_s0 + $0x20] sm:$0xff]  ;;  %v69_v13 = vld [vmem:[%s1261_s0 + $0x28] sm:$0xff] }
  0x21   :  { %833 = vmatprep.subr.mxu0 %v73_v3  ;;  %851 = vmatprep.subr.mxu1 %v227_v6  ;;  %v70_v14 = vld [vmem:[%s1261_s0 + $0x30] sm:$0xff]  ;;  %v71_v15 = vld [vmem:[%s1261_s0 + $0x38] sm:$0xff]  ;;  %v222_v18 = vld [vmem:[%s1264_s3 + $0x8] sm:$0xff] }
  0x22   :  { %834 = vmatpush3.msra.mxu0 %v73_v3  ;;  %852 = vmatpush3.msra.mxu1 %v227_v6  ;;  %v224_v16 = vld [vmem:[%s1264_s3 + $0x18] sm:$0xff]  ;;  %v223_v17 = vld [vmem:[%s1264_s3 + $0x10] sm:$0xff]  ;;  %v221_v19 = vld [vmem:[%s1264_s3] sm:$0xff] }
  0x23   :  { %835 = vmatprep.subr.mxu0 %v72_v4  ;;  %853 = vmatprep.subr.mxu1 %v226_v8  ;;  %v389_v20 = vld [vmem:[#allocation3 + $0x78] sm:$0xff]  ;;  %v388_v21 = vld [vmem:[#allocation3 + $0x70] sm:$0xff]  ;;  %v387_v22 = vld [vmem:[#allocation3 + $0x68] sm:$0xff] }
  0x24   :  { %836 = vmatpush3.msra.mxu0 %v72_v4  ;;  %854 = vmatpush3.msra.mxu1 %v226_v8  ;;  %v386_v23 = vld [vmem:[#allocation3 + $0x60] sm:$0xff]  ;;  %v385_v24 = vld [vmem:[#allocation3 + $0x58] sm:$0xff]  ;;  %v384_v25 = vld [vmem:[#allocation3 + $0x50] sm:$0xff] }
  0x25   :  { %838 = vmatmul.mubr.msk.f32.vlgmr.msra.gmra.mxu0 %vm83_vm0, %v65_v7  ;;  %855 = vmatprep.subr.mxu1 %v225_v10  ;;  %v383_v26 = vld [vmem:[#allocation3 + $0x48] sm:$0xff]  ;;  %v382_v27 = vld [vmem:[#allocation3 + $0x40] sm:$0xff]  ;;  %v381_v28 = vld [vmem:[#allocation3 + $0x38] sm:$0xff] }
  0x26   :  { %840 = vmatprep.mubr.msk.f32.mxu0 %vm83_vm0, %v66_v9  ;;  %856 = vmatpush3.msra.mxu1 %v225_v10  ;;  %v380_v29 = vld [vmem:[#allocation3 + $0x30] sm:$0xff]  ;;  %v750_v30 = vld [vmem:[%s1263_s2] ss:$0 sm:$0xff]  ;;  %v379_v55 = vld [vmem:[#allocation3 + $0x28] sm:$0xff] }
  0x27   :  { %857 = vmatprep.subr.mxu1 %v224_v16  ;;  %442 = vmatprep.subr.mxu0 %v389_v20  ;;  %v378_v56 = vld [vmem:[#allocation3 + $0x20] sm:$0xff]  ;;  %v377_v57 = vld [vmem:[#allocation3 + $0x18] sm:$0xff]  ;;  %v376_v58 = vld [vmem:[#allocation3 + $0x10] sm:$0xff] }
  0x28   :  { %858 = vmatpush3.msra.mxu1 %v224_v16  ;;  %443 = vmatpush1.msra.mxu0 %v388_v21  ;;  %v375_v59 = vld [vmem:[#allocation3 + $0x8] sm:$0xff]  ;;  %v374_v60 = vld [vmem:[#allocation3] sm:$0xff]  ;;  %v562_v62 = vld [vmem:[#allocation5 + $0x78] sm:$0xff] }
  0x29   :  { %841 = vmatmul.mubr.msk.f32.gmra.mxu0 %vm83_vm0, %v67_v11  ;;  %859 = vmatprep.subr.mxu1 %v223_v17  ;;  %v561_v63 = vld [vmem:[#allocation5 + $0x70] sm:$0xff]  ;;  %v560_v0 = vld [vmem:[#allocation5 + $0x68] sm:$0xff]  ;;  %v559_v1 = vld [vmem:[#allocation5 + $0x60] sm:$0xff] }
  0x2a   :  { %843 = vmatprep.mubr.msk.f32.mxu0 %vm83_vm0, %v68_v12  ;;  %860 = vmatpush3.msra.mxu1 %v223_v17  ;;  %v558_v2 = vld [vmem:[#allocation5 + $0x58] sm:$0xff]  ;;  %v557_v3 = vld [vmem:[#allocation5 + $0x50] sm:$0xff]  ;;  %v759_v5 = vld [vmem:[%s1265_s4] ss:$0 sm:$0xff] }
  0x2b   :  { %861 = vmatprep.subr.mxu1 %v222_v18  ;;  %444 = vmatprep.subr.mxu0 %v387_v22 }
  0x2c   :  { %862 = vmatpush3.msra.mxu1 %v222_v18  ;;  %445 = vmatpush1.msra.mxu0 %v386_v23 }
  0x2d   :  { %844 = vmatmul.mubr.msk.f32.gmra.mxu0 %vm83_vm0, %v69_v13  ;;  %863 = vmatprep.subr.mxu1 %v221_v19 }
  0x2e   :  { %846 = vmatprep.mubr.msk.f32.mxu0 %vm83_vm0, %v70_v14  ;;  %864 = vmatpush3.msra.mxu1 %v221_v19 }
  0x2f   :  { %446 = vmatprep.subr.mxu0 %v385_v24  ;;  %921 = vmatprep.subr.mxu1 %v562_v62 }
  0x30   :  { %447 = vmatpush1.msra.mxu0 %v384_v25 }
  0x31   :  { %847 = vmatmul.mubr.msk.f32.gmra.mxu0 %vm83_vm0, %v71_v15  ;;  %448 = vmatprep.subr.mxu0 %v383_v26 }
  0x32   :  { %449 = vmatpush1.msra.mxu0 %v382_v27  ;;  %490 = vmatprep.mubr.f32.mxu0 %v1026_v61 }
  0x33   :  { %450 = vmatprep.subr.mxu0 %v381_v28 }
  0x34   :  { %451 = vmatpush1.msra.mxu0 %v380_v29  ;;  %v556_v29 = vld [vmem:[#allocation5 + $0x48] sm:$0xff] }
  0x35   :  { %452 = vmatprep.subr.mxu0 %v379_v55 }
  0x36   :  { %453 = vmatpush1.msra.mxu0 %v378_v56 }
  0x37   :  { %454 = vmatprep.subr.mxu0 %v377_v57 }
  0x38   :  { %455 = vmatpush1.msra.mxu0 %v376_v58 }
  0x39   :  { %456 = vmatprep.subr.mxu0 %v375_v59 }
  0x3a   :  { %457 = vmatpush1.msra.mxu0 %v374_v60 }
  0x3b   :  { %877 = vmatprep.subr.mxu0 %v562_v62 }
  0xe5   :  { %v839_v31 = vpop.f32.mrf.mxu0 }
  0xe6   :  { %v180_v32 = vadd.f32 %v839_v31, %v750_v30  ;;  %v554_v31 = vld [vmem:[#allocation5 + $0x38] sm:$0xff] }
  0xe7   :  { %v174_v33 = vpop.f32.mrf.mxu0 }
  0xe8   :  { %v175_v34 = vadd.f32 %v750_v30, %v174_v33  ;;  %v214_v38 = vmax.f32 %v180_v32, 0.0  ;;  %v553_v32 = vld [vmem:[#allocation5 + $0x30] sm:$0xff]  ;;  %v552_v33 = vld [vmem:[#allocation5 + $0x28] sm:$0xff] }
  0xe9   :  { %v842_v35 = vpop.f32.mrf.mxu0 }
  0xea   :  { %v213_v36 = vmax.f32 %v175_v34, 0.0  ;;  %v190_v37 = vadd.f32 %v842_v35, %v750_v30  ;;  %v551_v34 = vld [vmem:[#allocation5 + $0x20] sm:$0xff]  ;;  %v550_v35 = vld [vmem:[#allocation5 + $0x18] sm:$0xff] }
  0xeb   :  { %v184_v39 = vpop.f32.mrf.mxu0 }
  0xec   :  { %v185_v40 = vadd.f32 %v750_v30, %v184_v39  ;;  %865 = vmatprep.mubr.msk.f32.mxu1 %vm236_vm1, %v213_v36  ;;  %v216_v41 = vmax.f32 %v190_v37, 0.0  ;;  %v549_v36 = vld [vmem:[#allocation5 + $0x10] sm:$0xff]  ;;  %v548_v37 = vld [vmem:[#allocation5 + $0x8] sm:$0xff]  ;;  %v392_v39 = vlaneseq }
  0xed   :  { %866 = vmatmul.mubr.msk.f32.vlgmr.msra.gmra.mxu1 %vm236_vm1, %v214_v38  ;;  %v845_v42 = vpop.f32.mrf.mxu0  ;;  %v547_v38 = vld [vmem:[#allocation5] sm:$0xff] }
  0xee   :  { %v215_v43 = vmax.f32 %v185_v40, 0.0  ;;  %v200_v44 = vadd.f32 %v845_v42, %v750_v30  ;;  %937 = vmatpush3.msra.mxu1 %v562_v62  ;;  %v393_v40 = vshrl.u32 %v392_v39, 7  ;;  %v390_v42 = vld [vmem:[%s1267_s6] sm:$0x3] }
  0xef   :  { %v194_v45 = vpop.f32.mrf.mxu0  ;;  %922 = vmatprep.subr.mxu1 %v561_v63 }
  0xf0   :  { %868 = vmatprep.mubr.msk.f32.mxu1 %vm236_vm1, %v215_v43  ;;  %v195_v46 = vadd.f32 %v750_v30, %v194_v45  ;;  %v218_v47 = vmax.f32 %v200_v44, 0.0  ;;  %938 = vmatpush3.msra.mxu1 %v561_v63 }
  0xf1   :  { %869 = vmatmul.mubr.msk.f32.gmra.mxu1 %vm236_vm1, %v216_v41  ;;  %v848_v48 = vpop.f32.mrf.mxu0  ;;  %923 = vmatprep.subr.mxu1 %v560_v0  ;;  %v394_v41 = vsub.s32 0, %v393_v40 }
  0xf2   :  { %v217_v49 = vmax.f32 %v195_v46, 0.0  ;;  %v210_v50 = vadd.f32 %v848_v48, %v750_v30  ;;  %939 = vmatpush3.msra.mxu1 %v560_v0 }
  0xf3   :  { %v204_v51 = vpop.f32.mrf.mxu0  ;;  %924 = vmatprep.subr.mxu1 %v559_v1  ;;  %v395_v43 = vrot.slane %v390_v42, %v394_v41 }
  0xf4   :  { %871 = vmatprep.mubr.msk.f32.mxu1 %vm236_vm1, %v217_v49  ;;  %v205_v52 = vadd.f32 %v750_v30, %v204_v51  ;;  %v220_v53 = vmax.f32 %v210_v50, 0.0  ;;  %940 = vmatpush3.msra.mxu1 %v559_v1  ;;  %v555_v30 = vld [vmem:[#allocation5 + $0x40] sm:$0xff] }
  0xf5   :  { %872 = vmatmul.mubr.msk.f32.gmra.mxu1 %vm236_vm1, %v218_v47  ;;  %925 = vmatprep.subr.mxu1 %v558_v2 }
  0xf6   :  { %v219_v54 = vmax.f32 %v205_v52, 0.0  ;;  %941 = vmatpush3.msra.mxu1 %v558_v2 }
  0xf7   :  { %926 = vmatprep.subr.mxu1 %v557_v3 }
  0xf8   :  { %874 = vmatprep.mubr.msk.f32.mxu1 %vm236_vm1, %v219_v54  ;;  %942 = vmatpush3.msra.mxu1 %v557_v3 }
  0xf9   :  { %875 = vmatmul.mubr.msk.f32.gmra.mxu1 %vm236_vm1, %v220_v53  ;;  %927 = vmatprep.subr.mxu1 %v556_v29 }
  0xfa   :  { %943 = vmatpush3.msra.mxu1 %v556_v29 }
  0xfb   :  { %928 = vmatprep.subr.mxu1 %v555_v30 }
  0xfc   :  { %944 = vmatpush3.msra.mxu1 %v555_v30 }
  0xfd   :  { %929 = vmatprep.subr.mxu1 %v554_v31 }
  0xfe   :  { %945 = vmatpush3.msra.mxu1 %v554_v31 }
  0xff   :  { %930 = vmatprep.subr.mxu1 %v553_v32 }
 0x100   :  { %946 = vmatpush3.msra.mxu1 %v553_v32 }
 0x101   :  { %931 = vmatprep.subr.mxu1 %v552_v33 }
 0x102   :  { %947 = vmatpush3.msra.mxu1 %v552_v33 }
 0x103   :  { %932 = vmatprep.subr.mxu1 %v551_v34 }
 0x104   :  { %948 = vmatpush3.msra.mxu1 %v551_v34 }
 0x105   :  { %933 = vmatprep.subr.mxu1 %v550_v35 }
 0x106   :  { %949 = vmatpush3.msra.mxu1 %v550_v35 }
 0x107   :  { %934 = vmatprep.subr.mxu1 %v549_v36 }
 0x108   :  { %950 = vmatpush3.msra.mxu1 %v549_v36 }
 0x109   :  { %935 = vmatprep.subr.mxu1 %v548_v37 }
 0x10a   :  { %951 = vmatpush3.msra.mxu1 %v548_v37 }
 0x10b   :  { %936 = vmatprep.subr.mxu1 %v547_v38 }
 0x10c   :  { %952 = vmatpush3.msra.mxu1 %v547_v38 }
 0x1ad   :  { %v867_v4 = vpop.f32.mrf.mxu1 }
 0x1ae   :  { %v333_v9 = vadd.f32 %v867_v4, %v759_v5 }
 0x1af   :  { %v327_v6 = vpop.f32.mrf.mxu1 }
 0x1b0   :  { %v328_v7 = vadd.f32 %v759_v5, %v327_v6  ;;  %v367_v12 = vmax.f32 %v333_v9, 0.0 }
 0x1b1   :  { %v870_v8 = vpop.f32.mrf.mxu1 }
 0x1b2   :  { %v366_v10 = vmax.f32 %v328_v7, 0.0  ;;  %v343_v15 = vadd.f32 %v870_v8, %v759_v5 }
 0x1b3   :  { %v337_v11 = vpop.f32.mrf.mxu1 }
 0x1b4   :  { %768 = vmatmul.mubr.msk.f32.vlgmr.msra.gmra.mxu0 %vm236_vm1, %v366_v10  ;;  %v338_v13 = vadd.f32 %v759_v5, %v337_v11  ;;  %v369_v18 = vmax.f32 %v343_v15, 0.0  ;;  %v398_v11 = vsub.s32 1, %v393_v40 }
 0x1b5   :  { %496 = vmatprep.mubr.f32.mxu0 %v1026_v61  ;;  %878 = vmatpush3.msra.mxu0 %v562_v62  ;;  %v873_v14 = vpop.f32.mrf.mxu1 }
 0x1b6   :  { %879 = vmatprep.subr.mxu0 %v561_v63  ;;  %v368_v16 = vmax.f32 %v338_v13, 0.0  ;;  %v353_v21 = vadd.f32 %v873_v14, %v759_v5 }
 0x1b7   :  { %880 = vmatpush3.msra.mxu0 %v561_v63  ;;  %v347_v17 = vpop.f32.mrf.mxu1 }
 0x1b8   :  { %769 = vmatmul.mubr.msk.f32.gmra.mxu0 %vm236_vm1, %v367_v12  ;;  %881 = vmatprep.subr.mxu0 %v560_v0  ;;  %v348_v19 = vadd.f32 %v759_v5, %v347_v17  ;;  %v371_v24 = vmax.f32 %v353_v21, 0.0  ;;  %v399_v12 = vrot.slane %v390_v42, %v398_v11 }
 0x1b9   :  { %502 = vmatprep.mubr.f32.mxu0 %v1026_v61  ;;  %882 = vmatpush3.msra.mxu0 %v560_v0  ;;  %v876_v20 = vpop.f32.mrf.mxu1 }
 0x1ba   :  { %883 = vmatprep.subr.mxu0 %v559_v1  ;;  %v370_v22 = vmax.f32 %v348_v19, 0.0  ;;  %v363_v26 = vadd.f32 %v876_v20, %v759_v5  ;;  %v776_v19 = vld [vmem:[%s1269_s8] ss:$0 sm:$0xff] }
 0x1bb   :  { %884 = vmatpush3.msra.mxu0 %v559_v1  ;;  %v357_v23 = vpop.f32.mrf.mxu1 }
 0x1bc   :  { %770 = vmatmul.mubr.msk.f32.gmra.mxu0 %vm236_vm1, %v368_v16  ;;  %885 = vmatprep.subr.mxu0 %v558_v2  ;;  %v358_v25 = vadd.f32 %v759_v5, %v357_v23  ;;  %v373_v28 = vmax.f32 %v363_v26, 0.0 }
 0x1bd   :  { %508 = vmatprep.mubr.f32.mxu0 %v1026_v61  ;;  %886 = vmatpush3.msra.mxu0 %v558_v2 }
 0x1be   :  { %887 = vmatprep.subr.mxu0 %v557_v3  ;;  %v372_v27 = vmax.f32 %v358_v25, 0.0 }
 0x1bf   :  { %888 = vmatpush3.msra.mxu0 %v557_v3 }
 0x1c0   :  { %771 = vmatmul.mubr.msk.f32.gmra.mxu0 %vm236_vm1, %v369_v18  ;;  %889 = vmatprep.subr.mxu0 %v556_v29 }
 0x1c1   :  { %514 = vmatprep.mubr.f32.mxu0 %v1026_v61  ;;  %890 = vmatpush3.msra.mxu0 %v556_v29 }
 0x1c2   :  { %891 = vmatprep.subr.mxu0 %v555_v30 }
 0x1c3   :  { %892 = vmatpush3.msra.mxu0 %v555_v30 }
 0x1c4   :  { %772 = vmatmul.mubr.msk.f32.gmra.mxu0 %vm236_vm1, %v370_v22  ;;  %893 = vmatprep.subr.mxu0 %v554_v31 }
 0x1c5   :  { %520 = vmatprep.mubr.f32.mxu0 %v1026_v61  ;;  %894 = vmatpush3.msra.mxu0 %v554_v31 }
 0x1c6   :  { %895 = vmatprep.subr.mxu0 %v553_v32 }
 0x1c7   :  { %896 = vmatpush3.msra.mxu0 %v553_v32 }
 0x1c8   :  { %773 = vmatmul.mubr.msk.f32.gmra.mxu0 %vm236_vm1, %v371_v24  ;;  %897 = vmatprep.subr.mxu0 %v552_v33 }
 0x1c9   :  { %526 = vmatprep.mubr.f32.mxu0 %v1026_v61  ;;  %898 = vmatpush3.msra.mxu0 %v552_v33 }
 0x1ca   :  { %899 = vmatprep.subr.mxu0 %v551_v34 }
 0x1cb   :  { %900 = vmatpush3.msra.mxu0 %v551_v34 }
 0x1cc   :  { %774 = vmatmul.mubr.msk.f32.gmra.mxu0 %vm236_vm1, %v372_v27  ;;  %901 = vmatprep.subr.mxu0 %v550_v35 }
 0x1cd   :  { %532 = vmatprep.mubr.f32.mxu0 %v1026_v61  ;;  %902 = vmatpush3.msra.mxu0 %v550_v35 }
 0x1ce   :  { %903 = vmatprep.subr.mxu0 %v549_v36 }
 0x1cf   :  { %904 = vmatpush3.msra.mxu0 %v549_v36 }
 0x1d0   :  { %775 = vmatmul.mubr.msk.f32.gmra.mxu0 %vm236_vm1, %v373_v28  ;;  %905 = vmatprep.subr.mxu0 %v548_v37 }
 0x1d1   :  { %906 = vmatpush3.msra.mxu0 %v548_v37 }
 0x1d2   :  { %907 = vmatprep.subr.mxu0 %v547_v38 }
 0x1d3   :  { %908 = vmatpush3.msra.mxu0 %v547_v38 }
 0x274   :  { %v492_v44 = vpop.f32.mrf.mxu0 }
 0x275   :  { %v493_v45 = vadd.f32 %v492_v44, %v395_v43 }
 0x276   :  { %v494_v46 = vpop.f32.mrf.mxu0 }
 0x277   :  { %960 = vtanh.f32 %v493_v45  ;;  %v495_v16 = vadd.f32 %v494_v46, %v399_v12 }
 0x278   :  { %v498_v47 = vpop.f32.mrf.mxu0 }
 0x279   :  { %v499_v48 = vadd.f32 %v498_v47, %v395_v43 }
 0x27a   :  { %v500_v49 = vpop.f32.mrf.mxu0 }
 0x27b   :  { %962 = vtanh.f32 %v499_v48  ;;  %v501_v14 = vadd.f32 %v500_v49, %v399_v12 }
 0x27c   :  { %v504_v50 = vpop.f32.mrf.mxu0 }
 0x27d   :  { %v505_v51 = vadd.f32 %v504_v50, %v395_v43 }
 0x27e   :  { %v506_v52 = vpop.f32.mrf.mxu0 }
 0x27f   :  { %964 = vtanh.f32 %v505_v51  ;;  %v507_v26 = vadd.f32 %v506_v52, %v399_v12 }
 0x280   :  { %v510_v53 = vpop.f32.mrf.mxu0 }
 0x281   :  { %v511_v54 = vadd.f32 %v510_v53, %v395_v43 }
 0x282   :  { %v512_v55 = vpop.f32.mrf.mxu0 }
 0x283   :  { %966 = vtanh.f32 %v511_v54  ;;  %v513_v24 = vadd.f32 %v512_v55, %v399_v12 }
 0x284   :  { %v1190_v56 = vpop.eup %960  ;;  %v516_v57 = vpop.f32.mrf.mxu0 }
 0x285   :  { %v517_v58 = vadd.f32 %v516_v57, %v395_v43  ;;  %909 = vmatprep.mubr.f32.mxu0 %v1190_v56  ;;  %v726_v57 = vand.u32 127, %v392_v39 }
 0x286   :  { %v518_v59 = vpop.f32.mrf.mxu0 }
 0x287   :  { %968 = vtanh.f32 %v517_v58  ;;  %v519_v36 = vadd.f32 %v518_v59, %v399_v12  ;;  %v716_v58 = vstv %s1270_s9  ;;  %vm727_vm2 = vcmp.eq.s32.totalorder %v726_v57, 16 }
 0x288   :  { %v1193_v60 = vpop.eup %962  ;;  %v522_v61 = vpop.f32.mrf.mxu0 }
 0x289   :  { %v523_v62 = vadd.f32 %v522_v61, %v395_v43  ;;  %910 = vmatmul.mubr.f32.vlgmr.msra.gmra.mxu0 %v1193_v60 }
 0x28a   :  { %v524_v63 = vpop.f32.mrf.mxu0 }
 0x28b   :  { %970 = vtanh.f32 %v523_v62  ;;  %v525_v34 = vadd.f32 %v524_v63, %v399_v12 }
 0x28c   :  { %v1196_v0 = vpop.eup %964  ;;  %v528_v1 = vpop.f32.mrf.mxu0 }
 0x28d   :  { %v529_v2 = vadd.f32 %v528_v1, %v395_v43  ;;  %912 = vmatprep.mubr.f32.mxu1 %v1196_v0 }
 0x28e   :  { %v530_v3 = vpop.f32.mrf.mxu0 }
 0x28f   :  { %972 = vtanh.f32 %v529_v2  ;;  %v531_v48 = vadd.f32 %v530_v3, %v399_v12 }
 0x290   :  { %v1199_v4 = vpop.eup %966  ;;  %v534_v5 = vpop.f32.mrf.mxu0 }
 0x291   :  { %v535_v6 = vadd.f32 %v534_v5, %v395_v43  ;;  %913 = vmatmul.mubr.f32.vlgmr.msra.gmra.mxu1 %v1199_v4 }
 0x292   :  { %v536_v13 = vpop.f32.mrf.mxu0 }
 0x293   :  { %974 = vtanh.f32 %v535_v6  ;;  %v537_v45 = vadd.f32 %v536_v13, %v399_v12 }
 0x294   :  { %v1202_v7 = vpop.eup %968 }
 0x295   :  { %915 = vmatprep.mubr.f32.mxu1 %v1202_v7 }
 0x298   :  { %v1205_v8 = vpop.eup %970 }
 0x299   :  { %916 = vmatmul.mubr.f32.gmra.mxu1 %v1205_v8 }
 0x29c   :  { %v1208_v9 = vpop.eup %972 }
 0x29d   :  { %918 = vmatprep.mubr.f32.mxu1 %v1208_v9 }
 0x2a0   :  { %v1211_v10 = vpop.eup %974 }
 0x2a1   :  { %919 = vmatmul.mubr.f32.gmra.mxu1 %v1211_v10 }
 0x349   :  { %v911_v15 = vpop.f32.mrf.mxu0 }
 0x34a   :  { %v669_v17 = vadd.f32 %v911_v15, %v501_v14 }
 0x34b   :  { %v629_v18 = vpop.f32.mrf.mxu0 }
 0x34c   :  { %v677_v20 = vmax.f32 %v669_v17, 0.0  ;;  %v668_v21 = vadd.f32 %v629_v18, %v495_v16 }
 0x34e   :  { %v676_v22 = vmax.f32 %v668_v21, 0.0  ;;  %v692_v23 = vmul.f32 %v776_v19, %v677_v20 }
 0x350   :  { %701 = vadd.xlane.f32.xlu0 %v692_v23  ;;  %v691_v28 = vmul.f32 %v776_v19, %v676_v22 }
 0x351   :  { %v914_v25 = vpop.f32.mrf.mxu1 }
 0x352   :  { %v671_v27 = vadd.f32 %v914_v25, %v513_v24 }
 0x353   :  { %v639_v29 = vpop.f32.mrf.mxu1 }
 0x354   :  { %v679_v30 = vmax.f32 %v671_v27, 0.0  ;;  %v670_v31 = vadd.f32 %v639_v29, %v507_v26  ;;  %699 = vadd.xlane.f32.xlu0 %v691_v28 }
 0x356   :  { %v678_v32 = vmax.f32 %v670_v31, 0.0  ;;  %v694_v33 = vmul.f32 %v776_v19, %v679_v30 }
 0x358   :  { %705 = vadd.xlane.f32.xlu1 %v694_v33  ;;  %v693_v38 = vmul.f32 %v776_v19, %v678_v32 }
 0x359   :  { %v917_v35 = vpop.f32.mrf.mxu1 }
 0x35a   :  { %v673_v37 = vadd.f32 %v917_v35, %v525_v34 }
 0x35b   :  { %v649_v40 = vpop.f32.mrf.mxu1 }
 0x35c   :  { %v681_v41 = vmax.f32 %v673_v37, 0.0  ;;  %v672_v42 = vadd.f32 %v649_v40, %v519_v36  ;;  %703 = vadd.xlane.f32.xlu1 %v693_v38 }
 0x35e   :  { %v680_v43 = vmax.f32 %v672_v42, 0.0  ;;  %v696_v44 = vmul.f32 %v776_v19, %v681_v41 }
 0x360   :  { %709 = vadd.xlane.f32.xlu1 %v696_v44  ;;  %v695_v46 = vmul.f32 %v776_v19, %v680_v43 }
 0x361   :  { %v920_v47 = vpop.f32.mrf.mxu1 }
 0x362   :  { %v675_v49 = vadd.f32 %v920_v47, %v537_v45  ;;  %707 = vadd.xlane.f32.xlu0 %v695_v46 }
 0x363   :  { %v659_v50 = vpop.f32.mrf.mxu1 }
 0x364   :  { %v683_v51 = vmax.f32 %v675_v49, 0.0  ;;  %v674_v52 = vadd.f32 %v659_v50, %v531_v48 }
 0x366   :  { %v682_v53 = vmax.f32 %v674_v52, 0.0  ;;  %v698_v54 = vmul.f32 %v776_v19, %v683_v51 }
 0x368   :  { %713 = vadd.xlane.f32.xlu1 %v698_v54  ;;  %v697_v55 = vmul.f32 %v776_v19, %v682_v53 }
 0x36a   :  { %711 = vadd.xlane.f32.xlu0 %v697_v55 }
 0x3d9   :  { %v702_v59 = vpop.xlane.xlu0 %701 }
 0x3da   :  { %v718_v61 = vadd.f32 %v716_v58, %v702_v59 }
 0x3dc   :  { %v729_v62 = vsel %vm727_vm2, %v718_v61, %v1193_v60 }
 0x3dd   :  { %737 = vst [vmem:[%s1271_s10 + $0x8] sm:$0xff] %v729_v62  ;;  %v700_v63 = vpop.xlane.xlu0 %699 }
 0x3de   :  { %v717_v1 = vadd.f32 %v716_v58, %v700_v63 }
 0x3e0   :  { %v728_v2 = vsel %vm727_vm2, %v717_v1, %v1190_v56 }
 0x3e1   :  { %736 = vst [vmem:[%s1271_s10] sm:$0xff] %v728_v2  ;;  %v706_v39 = vpop.xlane.xlu1 %705 }
 0x3e2   :  { %v720_v3 = vadd.f32 %v716_v58, %v706_v39 }
 0x3e4   :  { %v731_v5 = vsel %vm727_vm2, %v720_v3, %v1199_v4 }
 0x3e5   :  { %739 = vst [vmem:[%s1271_s10 + $0x18] sm:$0xff] %v731_v5  ;;  %v704_v60 = vpop.xlane.xlu1 %703 }
 0x3e6   :  { %v719_v6 = vadd.f32 %v716_v58, %v704_v60 }
 0x3e8   :  { %v730_v11 = vsel %vm727_vm2, %v719_v6, %v1196_v0 }
 0x3e9   :  { %738 = vst [vmem:[%s1271_s10 + $0x10] sm:$0xff] %v730_v11  ;;  %v710_v56 = vpop.xlane.xlu1 %709 }
 0x3ea   :  { %v722_v12 = vadd.f32 %v716_v58, %v710_v56 }
 0x3eb   :  { %v708_v13 = vpop.xlane.xlu0 %707 }
 0x3ec   :  { %v733_v14 = vsel %vm727_vm2, %v722_v12, %v1205_v8  ;;  %v721_v4 = vadd.f32 %v716_v58, %v708_v13 }
 0x3ed   :  { %741 = vst [vmem:[%s1271_s10 + $0x28] sm:$0xff] %v733_v14 }
 0x3ee   :  { %v732_v15 = vsel %vm727_vm2, %v721_v4, %v1202_v7 }
 0x3ef   :  { %740 = vst [vmem:[%s1271_s10 + $0x20] sm:$0xff] %v732_v15 }
 0x3f1   :  { %v714_v0 = vpop.xlane.xlu1 %713 }
 0x3f2   :  { %v724_v16 = vadd.f32 %v716_v58, %v714_v0 }
 0x3f3   :  { %v712_v17 = vpop.xlane.xlu0 %711 }
 0x3f4   :  { %v735_v18 = vsel %vm727_vm2, %v724_v16, %v1211_v10  ;;  %v723_v19 = vadd.f32 %v716_v58, %v712_v17 }
 0x3f5   :  { %743 = vst [vmem:[%s1271_s10 + $0x38] sm:$0xff] %v735_v18 }
 0x3f6   :  { %v734_v8 = vsel %vm727_vm2, %v723_v19, %v1208_v9 }
 0x3f7   :  { %742 = vst [vmem:[%s1271_s10 + $0x30] sm:$0xff] %v734_v8 }
 0x3f8   :  { %748 = vsyncpa [#allocation4], 1 }
 0x3f9   :  { %749 = vsyncpa [#allocation6], 1 }

</bundles_post_ra>
